<compile_context>
chip_gen: v7x
topology: tpu7x:2x2x1
jax: 0.10.0
libtpu: 0.0.40
codegen_flags: <defaults>
</compile_context>

<pallas_src>
import functools

import jax
import jax.numpy as jnp
from jax.experimental import pallas as pl
from jax.experimental.pallas import tpu as pltpu

_LANE = 128


def _mlp_kernel(x_ref, w1_ref, b1_ref, w2_ref, b2_ref, o_ref):
    x = x_ref[...]                                  # (2, TB)  f32
    w1 = w1_ref[...]                                # (10, 2)
    # fc1 as VPU broadcast-FMA: h[j, b] = w1[j,0]*x[0,b] + w1[j,1]*x[1,b] + b1[j]
    h = (w1[:, 0:1] * x[0:1, :]
         + w1[:, 1:2] * x[1:2, :]
         + b1_ref[...])                             # (10, TB)
    h = jax.nn.sigmoid(h)
    # fc2: weighted sublane reduction over the 10 hidden rows, then bias + sigmoid.
    y = jnp.sum(w2_ref[...] * h, axis=0, keepdims=True) + b2_ref[...]   # (1, TB)
    o_ref[...] = jax.nn.sigmoid(y).astype(o_ref.dtype)


@functools.partial(jax.jit, static_argnames=("tb",))
def torch_nn_forward(x, w1, b1, w2, b2, *, tb=512):
    """Forward pass of TorchNN.

    x : (B, 2)  float32
    w1: (10, 2), b1: (10,)    -- PyTorch fc1 layout
    w2: (1, 10), b2: (1,)     -- PyTorch fc2 layout
    returns (B, 1) float32
    """
    B = x.shape[0]
    # Batch tile in lane columns. Pad B so the grid divides evenly; padded
    # columns are computed then sliced off.
    b_min = pl.cdiv(B, _LANE) * _LANE
    tb_eff = min(tb, b_min)                         # multiple of 128
    b_pad = pl.cdiv(B, tb_eff) * tb_eff
    grid = (b_pad // tb_eff,)

    # Wrapper-side layout plumbing: batch -> lane axis.
    x_t = jnp.pad(x, ((0, b_pad - B), (0, 0))).T    # (2, b_pad)
    b1_k = b1.reshape(10, 1)
    w2_k = w2.reshape(10, 1)                        # (1, 10) -> (10, 1)
    b2_k = b2.reshape(1, 1)

    out_t = pl.pallas_call(
        _mlp_kernel,
        out_shape=jax.ShapeDtypeStruct((1, b_pad), jnp.float32),
        grid=grid,
        in_specs=[
            pl.BlockSpec((2, tb_eff), lambda i: (0, i)),   # x (batch on lanes)
            pl.BlockSpec((10, 2), lambda i: (0, 0)),       # w1, VMEM-resident
            pl.BlockSpec((10, 1), lambda i: (0, 0)),       # b1
            pl.BlockSpec((10, 1), lambda i: (0, 0)),       # w2
            pl.BlockSpec((1, 1), lambda i: (0, 0)),        # b2
        ],
        out_specs=pl.BlockSpec((1, tb_eff), lambda i: (0, i)),
        compiler_params=pltpu.CompilerParams(
            dimension_semantics=("parallel",)),
    )(x_t, w1, b1_k, w2_k, b2_k)

    return out_t.T[:B]                              # (B, 1)


def init_params(key):
    """Deterministic init matching PyTorch nn.Linear shapes/layout."""
    k1, k2, k3, k4 = jax.random.split(key, 4)
    lim1 = 1.0 / jnp.sqrt(2.0)   # fc1: fan_in = 2
    lim2 = 1.0 / jnp.sqrt(10.0)  # fc2: fan_in = 10
    w1 = jax.random.uniform(k1, (10, 2), jnp.float32, -lim1, lim1)
    b1 = jax.random.uniform(k2, (10,), jnp.float32, -lim1, lim1)
    w2 = jax.random.uniform(k3, (1, 10), jnp.float32, -lim2, lim2)
    b2 = jax.random.uniform(k4, (1,), jnp.float32, -lim2, lim2)
    return w1, b1, w2, b2


def _reference(x, w1, b1, w2, b2):
    return jax.nn.sigmoid(jax.nn.sigmoid(x @ w1.T + b1) @ w2.T + b2)


if __name__ == "__main__":
    key = jax.random.PRNGKey(0)
    k_x, k_p = jax.random.split(key)
    w1, b1, w2, b2 = init_params(k_p)

    # Small-batch demo (matches the PyTorch module's typical usage).
    batch = 8
    x = jax.random.normal(k_x, (batch, 2), jnp.float32)
    out = torch_nn_forward(x, w1, b1, w2, b2)
    jax.block_until_ready(out)
    ref = _reference(x, w1, b1, w2, b2)
    assert out.shape == (batch, 1)
    assert jnp.allclose(out, ref, atol=1e-5, rtol=1e-5)

    # Larger batch exercises the multi-tile grid + padded-tail path.
    batch2 = 600
    x2 = jax.random.normal(k_x, (batch2, 2), jnp.float32)
    out2 = torch_nn_forward(x2, w1, b1, w2, b2)
    jax.block_until_ready(out2)
    ref2 = _reference(x2, w1, b1, w2, b2)
    assert out2.shape == (batch2, 1)
    assert jnp.allclose(out2, ref2, atol=1e-5, rtol=1e-5)

    print("KERNEL_OK")
</pallas_src>

<mosaic_0001>
module attributes {stable_mosaic.version = 11 : i64} {
  func.func @_mlp_kernel(%arg0: i32, %arg1: memref<2x128xf32, #tpu.memory_space<vmem>>, %arg2: memref<10x2xf32, #tpu.memory_space<vmem>>, %arg3: memref<10x1xf32, #tpu.memory_space<vmem>>, %arg4: memref<10x1xf32, #tpu.memory_space<vmem>>, %arg5: memref<1x1xf32, #tpu.memory_space<vmem>>, %arg6: memref<1x128xf32, #tpu.memory_space<vmem>>) attributes {dimension_semantics = [#tpu.dimension_semantics<parallel>], iteration_bounds = array<i64: 1>, scalar_prefetch = 0 : i64, scratch_operands = 0 : i64, tpu.core_type = #tpu.core_type<tc>, window_params = [{transform_indices = @transform_0, window_bounds = array<i64: 2, 128>}, {pipeline_mode = #tpu.pipeline_mode<synchronous>, transform_indices = @transform_1, window_bounds = array<i64: 10, 2>}, {pipeline_mode = #tpu.pipeline_mode<synchronous>, transform_indices = @transform_2, window_bounds = array<i64: 10, 1>}, {pipeline_mode = #tpu.pipeline_mode<synchronous>, transform_indices = @transform_3, window_bounds = array<i64: 10, 1>}, {pipeline_mode = #tpu.pipeline_mode<synchronous>, transform_indices = @transform_4, window_bounds = array<i64: 1, 1>}, {transform_indices = @transform_5, window_bounds = array<i64: 1, 128>}]} {
    %c0 = arith.constant 0 : index
    %c0_0 = arith.constant 0 : index
    %0 = vector.load %arg1[%c0, %c0_0] : memref<2x128xf32, #tpu.memory_space<vmem>>, vector<2x128xf32>
    %c0_1 = arith.constant 0 : index
    %c0_2 = arith.constant 0 : index
    %1 = vector.load %arg2[%c0_1, %c0_2] : memref<10x2xf32, #tpu.memory_space<vmem>>, vector<10x2xf32>
    %2 = vector.extract_strided_slice %1 {offsets = [0, 0], sizes = [10, 1], strides = [1, 1]} : vector<10x2xf32> to vector<10x1xf32>
    %3 = vector.extract_strided_slice %0 {offsets = [0, 0], sizes = [1, 128], strides = [1, 1]} : vector<2x128xf32> to vector<1x128xf32>
    %4 = vector.broadcast %2 : vector<10x1xf32> to vector<10x128xf32>
    %5 = vector.broadcast %3 : vector<1x128xf32> to vector<10x128xf32>
    %6 = arith.mulf %4, %5 : vector<10x128xf32>
    %7 = vector.extract_strided_slice %1 {offsets = [0, 1], sizes = [10, 1], strides = [1, 1]} : vector<10x2xf32> to vector<10x1xf32>
    %8 = vector.extract_strided_slice %0 {offsets = [1, 0], sizes = [1, 128], strides = [1, 1]} : vector<2x128xf32> to vector<1x128xf32>
    %9 = vector.broadcast %7 : vector<10x1xf32> to vector<10x128xf32>
    %10 = vector.broadcast %8 : vector<1x128xf32> to vector<10x128xf32>
    %11 = arith.mulf %9, %10 : vector<10x128xf32>
    %12 = arith.addf %6, %11 : vector<10x128xf32>
    %c0_3 = arith.constant 0 : index
    %c0_4 = arith.constant 0 : index
    %13 = vector.load %arg3[%c0_3, %c0_4] : memref<10x1xf32, #tpu.memory_space<vmem>>, vector<10x1xf32>
    %14 = vector.broadcast %13 : vector<10x1xf32> to vector<10x128xf32>
    %15 = arith.addf %12, %14 : vector<10x128xf32>
    %16 = arith.negf %15 : vector<10x128xf32>
    %17 = math.exp %16 : vector<10x128xf32>
    %cst = arith.constant 1.000000e+00 : f32
    %18 = vector.broadcast %cst : f32 to vector<10x128xf32>
    %19 = arith.addf %18, %17 : vector<10x128xf32>
    %20 = arith.divf %18, %19 : vector<10x128xf32>
    %c0_5 = arith.constant 0 : index
    %c0_6 = arith.constant 0 : index
    %21 = vector.load %arg4[%c0_5, %c0_6] : memref<10x1xf32, #tpu.memory_space<vmem>>, vector<10x1xf32>
    %22 = vector.broadcast %21 : vector<10x1xf32> to vector<10x128xf32>
    %23 = arith.mulf %22, %20 : vector<10x128xf32>
    %cst_7 = arith.constant dense<0.000000e+00> : vector<128xf32>
    %24 = vector.multi_reduction <add>, %23, %cst_7 [0] : vector<10x128xf32> to vector<128xf32>
    %25 = vector.shape_cast %24 : vector<128xf32> to vector<1x128xf32>
    %c0_8 = arith.constant 0 : index
    %c0_9 = arith.constant 0 : index
    %26 = vector.load %arg5[%c0_8, %c0_9] : memref<1x1xf32, #tpu.memory_space<vmem>>, vector<1x1xf32>
    %27 = vector.broadcast %26 : vector<1x1xf32> to vector<1x128xf32>
    %28 = arith.addf %25, %27 : vector<1x128xf32>
    %29 = arith.negf %28 : vector<1x128xf32>
    %30 = math.exp %29 : vector<1x128xf32>
    %cst_10 = arith.constant 1.000000e+00 : f32
    %31 = vector.broadcast %cst_10 : f32 to vector<1x128xf32>
    %32 = arith.addf %31, %30 : vector<1x128xf32>
    %33 = arith.divf %31, %32 : vector<1x128xf32>
    %c0_11 = arith.constant 0 : index
    %c0_12 = arith.constant 0 : index
    %34 = vector.load %arg6[%c0_11, %c0_12] : memref<1x128xf32, #tpu.memory_space<vmem>>, vector<1x128xf32>
    tpu.vector_store %arg6[%c0_11, %c0_12], %33 {strides = array<i32>} : memref<1x128xf32, #tpu.memory_space<vmem>>, vector<1x128xf32>,
    return
  }
  func.func @transform_0(%arg0: i32) -> (i32, i32) {
    %c0_i32 = arith.constant 0 : i32
    %c0_i32_0 = arith.constant 0 : i32
    return %c0_i32, %arg0 : i32, i32
  }
  func.func @transform_1(%arg0: i32) -> (i32, i32) {
    %c0_i32 = arith.constant 0 : i32
    %c0_i32_0 = arith.constant 0 : i32
    %c0_i32_1 = arith.constant 0 : i32
    return %c0_i32, %c0_i32_0 : i32, i32
  }
  func.func @transform_2(%arg0: i32) -> (i32, i32) {
    %c0_i32 = arith.constant 0 : i32
    %c0_i32_0 = arith.constant 0 : i32
    %c0_i32_1 = arith.constant 0 : i32
    return %c0_i32, %c0_i32_0 : i32, i32
  }
  func.func @transform_3(%arg0: i32) -> (i32, i32) {
    %c0_i32 = arith.constant 0 : i32
    %c0_i32_0 = arith.constant 0 : i32
    %c0_i32_1 = arith.constant 0 : i32
    return %c0_i32, %c0_i32_0 : i32, i32
  }
  func.func @transform_4(%arg0: i32) -> (i32, i32) {
    %c0_i32 = arith.constant 0 : i32
    %c0_i32_0 = arith.constant 0 : i32
    %c0_i32_1 = arith.constant 0 : i32
    return %c0_i32, %c0_i32_0 : i32, i32
  }
  func.func @transform_5(%arg0: i32) -> (i32, i32) {
    %c0_i32 = arith.constant 0 : i32
    %c0_i32_0 = arith.constant 0 : i32
    return %c0_i32, %arg0 : i32, i32
  }
}

</mosaic_0001>

<bundles_post_ra>
// kernel: torch_nn_forward.1
= control target key start
LH: loop header
LB: loop body
LE: loop exit
PB: predicated region body
PF: predicated region fallthrough
CT: control target
= control target key end

     0   :  { %v151_v0 = vmov 0   ;;  %v152_v4 = vmov 1   ;;  %v35_v10 = vlaneseq  ;;  %vm97_vm0 = vcmask 1041408   ;;  %s210_s1 = inlined_call_operand.vmem [shape: f32[10,2], index: 1, kind: input, shape index: {}]   ;;  %s211_s4 = inlined_call_operand.<no memory space> [shape: f32[1,1], index: 4, kind: input, shape index: {}]   ;;  %s212_s2 = inlined_call_operand.vmem [shape: f32[10,1], index: 2, kind: input, shape index: {}]   ;;  %s213_s3 = inlined_call_operand.vmem [shape: f32[10,1], index: 3, kind: input, shape index: {}]   ;;  %s214_s0 = inlined_call_operand.vmem [shape: f32[2,128], index: 0, kind: input, shape index: {}]   ;;  %s215_s5 = inlined_call_operand.vmem [shape: f32[1,128], index: 5, kind: output, shape index: {}]  }
   0x1   :  { %135 = vset.pattern.permute.xlu1 %v151_v0  ;;  %133 = vset.pattern.permute.xlu0 %v151_v0  ;;  %v24_v1 = vld [vmem:[%s210_s1 + $0x8] sm:$0x3]  ;;  %v23_v2 = vld [vmem:[%s210_s1] sm:$0xff]  ;;  %v10_v3 = vstv %s211_s4 }
   0x2   :  { %32 = vperm.xlu0 %133, %v24_v1   ;;  %27 = vperm.xlu1 %135, %v23_v2   ;;  %11 = vst [vmem:[#allocation2] sm:$0x1] %v10_v3  ;;  %v57_v5 = vld [vmem:[%s212_s2] sm:$0xff]  ;;  %v58_v6 = vld [vmem:[%s212_s2 + $0x8] sm:$0x3]  ;;  %v36_v11 = vshrl.u32 %v35_v10, 7 }
   0x3   :  { %v84_v8 = vld [vmem:[%s213_s3 + $0x8] sm:$0x3]  ;;  %v83_v9 = vld [vmem:[%s213_s3] sm:$0xff] }
   0x4   :  { %v37_v12 = vsub.s32 0, %v36_v11  ;;  %v51_v13 = vsub.s32 1, %v36_v11  ;;  %v22_v14 = vld [vmem:[%s214_s0] sm:$0x3] }
   0x6   :  { %134 = vset.pattern.permute.xlu0 %v152_v4  ;;  %136 = vset.pattern.permute.xlu1 %v152_v4  ;;  %v38_v17 = vrot.slane %v22_v14, %v37_v12  ;;  %v52_v18 = vrot.slane %v22_v14, %v51_v13 }
   0x7   :  { %46 = vperm.xlu0 %134, %v24_v1   ;;  %42 = vperm.xlu1 %136, %v23_v2  }
   0x9   :  { %v106_v7 = vld [vmem:[#allocation2] sm:$0x1] }
   0xb   :  { %138 = vset.pattern.permute.xlu0 %v151_v0  ;;  %137 = vset.pattern.permute.xlu1 %v151_v0 }
   0xc   :  { %61 = vperm.xlu0 %138, %v57_v5   ;;  %66 = vperm.xlu1 %137, %v58_v6  }
  0x10   :  { %109 = vperm.xlu0 %138, %v106_v7   ;;  %92 = vperm.xlu1 %137, %v84_v8  }
  0x14   :  { %87 = vperm.xlu1 %137, %v83_v9  }
  0x81   :  { %v28_v15 = vpop.permute.xlu1 %27  ;;  %v33_v16 = vpop.permute.xlu0 %32 }
  0x82   :  { %v39_v21 = vmul.f32 %v38_v17, %v28_v15  ;;  %v40_v22 = vmul.f32 %v38_v17, %v33_v16 }
  0x86   :  { %v47_v19 = vpop.permute.xlu0 %46  ;;  %v43_v20 = vpop.permute.xlu1 %42 }
  0x87   :  { %v54_v23 = vmul.f32 %v52_v18, %v47_v19  ;;  %v53_v24 = vmul.f32 %v52_v18, %v43_v20 }
  0x89   :  { %v55_v25 = vadd.f32 %v53_v24, %v39_v21  ;;  %v56_v26 = vadd.f32 %v54_v23, %v40_v22 }
  0x8b   :  { %v62_v27 = vpop.permute.xlu0 %61  ;;  %v67_v28 = vpop.permute.xlu1 %66 }
  0x8c   :  { %v69_v29 = vadd.f32 %v62_v27, %v55_v25  ;;  %v70_v30 = vadd.f32 %v67_v28, %v56_v26 }
  0x8e   :  { %v128_v31 = vmul.f32 -1.442695, %v69_v29  ;;  %v129_v32 = vmul.f32 -1.442695, %v70_v30 }
  0x8f   :  { %v93_v37 = vpop.permute.xlu1 %92  ;;  %v110_v49 = vpop.permute.xlu0 %109 }
  0x90   :  { %139 = vpow2.f32 %v128_v31  ;;  %v115_v51 = vrot.slane %v110_v49, %v37_v12 }
  0x91   :  { %141 = vpow2.f32 %v129_v32 }
  0x93   :  { %v88_v39 = vpop.permute.xlu1 %87 }
  0x9a   :  { %v140_v33 = vpop.eup %139 }
  0x9b   :  { %v142_v34 = vpop.eup %141  ;;  %v77_v35 = vadd.f32 1.0, %v140_v33 }
  0x9c   :  { %v78_v36 = vadd.f32 1.0, %v142_v34 }
  0x9d   :  { %143 = vrcp.f32 %v77_v35 }
  0x9e   :  { %145 = vrcp.f32 %v78_v36 }
  0xa7   :  { %v144_v38 = vpop.eup %143 }
  0xa8   :  { %v146_v40 = vpop.eup %145  ;;  %v95_v41 = vmul.f32 %v144_v38, %v88_v39 }
  0xa9   :  { %v96_v42 = vmul.f32 %v146_v40, %v93_v37 }
  0xab   :  { %v98_v43 = vsel %vm97_vm0, %v96_v42, 0.0 }
  0xac   :  { %v99_v44 = vadd.f32 %v98_v43, %v95_v41 }
  0xae   :  { %v100_v45 = vrot.slane %v99_v44, 4 }
  0xb0   :  { %v101_v46 = vadd.f32 %v100_v45, %v99_v44 }
  0xb2   :  { %v102_v47 = vrot.slane %v101_v46, 2 }
  0xb4   :  { %v103_v48 = vadd.f32 %v102_v47, %v101_v46 }
  0xb6   :  { %v104_v50 = vrot.slane %v103_v48, 1 }
  0xb8   :  { %v105_v52 = vadd.f32 %v104_v50, %v103_v48 }
  0xba   :  { %v116_v53 = vadd.f32 %v115_v51, %v105_v52 }
  0xbc   :  { %v130_v54 = vmul.f32 -1.442695, %v116_v53 }
  0xbe   :  { %147 = vpow2.f32 %v130_v54 }
  0xc8   :  { %v148_v55 = vpop.eup %147 }
  0xc9   :  { %v120_v56 = vadd.f32 1.0, %v148_v55 }
  0xcb   :  { %149 = vrcp.f32 %v120_v56 }
  0xd5   :  { %v150_v57 = vpop.eup %149 }
  0xd6   :  { %123 = vst [vmem:[%s215_s5] sm:$0x1] %v150_v57 }

</bundles_post_ra>
